<compile_context>
chip_gen: v6e
topology: v6e:2x2x1
jax: 0.10.0
libtpu: 0.0.40
codegen_flags: <defaults>
</compile_context>

<pallas_src>
import functools
import math

import jax
import jax.numpy as jnp
from jax.experimental import pallas as pl
from jax.experimental.pallas import tpu as pltpu


_MiB = 1024 * 1024
_SUBLANE = 8
_LANE = 128
_ROW_ALIGN = 32          # int8 mask output packs 4 rows/sublane -> keep row blocks 32-aligned
_BH_MAX = 1024           # diminishing returns past ~512-1024 rows per step


def _round_up(x, m):
    return ((x + m - 1) // m) * m


def _round_down(x, m):
    return (x // m) * m


def _vmem_budget():
    """Generation-aware (budget_bytes, vmem_limit_bytes) for the double-buffered
    per-step footprint. v7x: ~46 MiB / 56 MiB; v5e/v6e (128 MiB VMEM): 56 / 68."""
    try:
        cap = int(pltpu.get_tpu_info().vmem_capacity_bytes)
    except Exception:
        cap = 64 * _MiB   # conservative fallback: v7x per-TensorCore VMEM
    budget = min(56 * _MiB, int(cap * 0.72))
    limit = max(32 * _MiB, min(cap - 8 * _MiB, budget + 12 * _MiB))
    return budget, limit


def _choose_tiles(H, W, in_bytes, budget_bytes):
    """Pick (BH, BW) blocks for a [H, W] streaming elementwise kernel with
    2 inputs (in_bytes each), 4 f32 outputs and 1 int8 output, double buffered."""
    bpe = 2 * (2 * in_bytes + 4 * 4 + 1)               # bytes/elem of tile footprint
    budget_elems = max(budget_bytes // bpe, _ROW_ALIGN * _LANE)

    # Lane (last) dim: prefer full-width blocks (one contiguous HBM DMA per row
    # block, no ragged last-column blocks); only cap for extremely wide rows.
    rows_floor = _ROW_ALIGN if H > _SUBLANE else max(H, 1)
    if W <= budget_elems // rows_floor or W <= _LANE:
        BW = W
    else:
        BW = max(_LANE, _round_down(budget_elems // rows_floor, _LANE))

    # Row (second-minor) dim: as large as the budget allows, 32-aligned.
    if H <= _SUBLANE:
        BH = H                                          # block equals full array dim -> legal
    else:
        BH = _round_down(budget_elems // BW, _ROW_ALIGN)
        BH = max(_ROW_ALIGN, min(BH, _BH_MAX, _round_up(H, _ROW_ALIGN)))

    # Keep >= 2 total grid steps (pipelining + v7x megacore sharding), but only
    # when the column axis does not already provide them (don't shrink BH otherwise).
    if H > _ROW_ALIGN and pl.cdiv(H, BH) * pl.cdiv(W, BW) < 2:
        BH = min(BH, max(_ROW_ALIGN, _round_up(pl.cdiv(H, 2), _ROW_ALIGN)))
    return BH, BW


def _atan2(y, x):
    """atan2 from VPU/EUP-friendly ops (abs/min/max/mul/add/where + EUP recip).
    Minimax polynomial for atan on [0, 1]; total error ~1e-4 rad.
    TODO(synk): differs from jnp.arctan2 / torch.atan2 on signed-zero edge cases
    (e.g. arctan2(-0.0, -1.0) = -pi vs +pi here)."""
    pi = math.pi
    ax = jnp.abs(x)
    ay = jnp.abs(y)
    mx = jnp.maximum(ax, ay)
    mn = jnp.minimum(ax, ay)
    safe_mx = jnp.where(mx > 0.0, mx, 1.0)
    # EUP approx reciprocal: moves the divide off the VALU into the otherwise
    # idle EUP slot; error well inside the theta tolerance.
    t = jnp.where(mx > 0.0, mn * pl.reciprocal(safe_mx, approx=True), 0.0)
    s = t * t
    # atan(t) ~= t * (c0 + s*(c1 + s*(c2 + s*(c3 + s*c4)))) on t in [0, 1]
    r = 0.0208351
    r = r * s - 0.0851330
    r = r * s + 0.1801410
    r = r * s - 0.3302995
    r = r * s + 0.9998660
    r = r * t
    r = jnp.where(ay > ax, (pi / 2.0) - r, r)   # octant fold: |y| > |x|
    r = jnp.where(x < 0.0, pi - r, r)           # left half-plane
    r = jnp.where(y < 0.0, -r, r)               # lower half-plane
    return r


def generalized_cubic_kernel(kx_ref, ky_ref,
                             kxs_ref, kys_ref, rho_ref, theta_ref, mask_ref,
                             *, fna):
    # Cast inside the kernel (bf16 inputs accepted); exact division by fNA so the
    # scaled grids / rho / mask match the reference math bit-for-bit.
    kx = kx_ref[...].astype(jnp.float32) / fna
    ky = ky_ref[...].astype(jnp.float32) / fna
    r2 = kx * kx + ky * ky
    kxs_ref[...] = kx
    kys_ref[...] = ky
    rho_ref[...] = jnp.sqrt(r2)
    theta_ref[...] = _atan2(ky, kx)
    # int8 mask stream: ~11% less HBM traffic than f32; widened lazily outside.
    mask_ref[...] = (r2 <= 1.0).astype(jnp.int8)


def generalized_cubic_precompute(kx, ky, fNA):
    """Runs the elementwise __init__ math of GeneralizedCubic in one Pallas kernel.
    Returns (kx/fNA, ky/fNA, rho, theta, mask_int8); the first four are float32."""
    H, W = kx.shape
    in_bytes = max(jnp.dtype(kx.dtype).itemsize, jnp.dtype(ky.dtype).itemsize)
    budget, vmem_limit = _vmem_budget()
    BH, BW = _choose_tiles(H, W, in_bytes, budget)
    grid = (pl.cdiv(H, BH), pl.cdiv(W, BW))   # cdiv grid: ragged edges handled by Pallas

    kernel = functools.partial(generalized_cubic_kernel, fna=float(fNA))
    spec = pl.BlockSpec((BH, BW), lambda i, j: (i, j))
    out_shape = (
        jax.ShapeDtypeStruct((H, W), jnp.float32),   # kx / fNA
        jax.ShapeDtypeStruct((H, W), jnp.float32),   # ky / fNA
        jax.ShapeDtypeStruct((H, W), jnp.float32),   # rho
        jax.ShapeDtypeStruct((H, W), jnp.float32),   # theta
        jax.ShapeDtypeStruct((H, W), jnp.int8),      # pupil mask (narrow stream)
    )

    return pl.pallas_call(
        kernel,
        out_shape=out_shape,
        grid=grid,
        in_specs=[spec, spec],
        out_specs=(spec, spec, spec, spec, spec),
        compiler_params=pltpu.CompilerParams(
            dimension_semantics=("parallel", "parallel"),
            vmem_limit_bytes=int(vmem_limit)),
    )(kx, ky)


class GeneralizedCubic:
    def __init__(self, kx, ky, fNA=0.8 / 0.55, n_immersion=1.33, wavelength=0.55):
        self.fNA = fNA
        kxs, kys, rho, theta, mask_i8 = generalized_cubic_precompute(kx, ky, fNA)
        self.kx = kxs
        self.ky = kys
        self.rho = rho
        self.theta = theta
        self._mask_i8 = mask_i8      # narrow kernel output
        self._mask_f32 = None        # lazily widened reference-dtype view
        self.n_immersion = n_immersion
        self.wavelength = wavelength
        self.k = self.n_immersion / self.wavelength

    @property
    def mask(self):
        # Reference stores a float32 buffer; widen the int8 stream lazily so the
        # extra HBM pass only happens if the mask is actually consumed.
        if self._mask_f32 is None:
            self._mask_f32 = self._mask_i8.astype(jnp.float32)
        return self._mask_f32

    def forward(self):
        # TODO(synk): reference forward() is a stub that returns the constant 0;
        # there is no phase-mask computation to port beyond the init buffers.
        P = 0
        return P

    __call__ = forward


if __name__ == "__main__":
    key = jax.random.PRNGKey(0)
    kx_key, ky_key = jax.random.split(key)
    H, W = 64, 256
    # deterministic example frequency grids (roughly spanning the pupil)
    kx = jax.random.uniform(kx_key, (H, W), jnp.float32, minval=-2.0, maxval=2.0)
    ky = jax.random.uniform(ky_key, (H, W), jnp.float32, minval=-2.0, maxval=2.0)

    mod = GeneralizedCubic(kx, ky)

    # block on the kernel outputs
    jax.block_until_ready((mod.kx, mod.ky, mod.rho, mod.theta, mod._mask_i8))

    # pure-JAX reference check of the init-time elementwise math
    fNA = 0.8 / 0.55
    kx_r = kx / fNA
    ky_r = ky / fNA
    r2_r = kx_r ** 2 + ky_r ** 2
    rho_r = jnp.sqrt(r2_r)
    theta_r = jnp.arctan2(ky_r, kx_r)
    mask_r = (r2_r <= 1.0).astype(jnp.float32)

    assert jnp.allclose(mod.kx, kx_r, atol=1e-6)
    assert jnp.allclose(mod.ky, ky_r, atol=1e-6)
    assert jnp.allclose(mod.rho, rho_r, atol=1e-5)
    assert jnp.allclose(mod.theta, theta_r, atol=2e-3)
    # mask must match except (at most) samples sitting exactly on the rho == 1
    # boundary, where a last-ulp difference could legitimately flip the bit.
    mismatch = mod.mask != mask_r
    boundary = jnp.abs(r2_r - 1.0) < 1e-5
    assert bool(jnp.all(jnp.logical_or(~mismatch, boundary)))

    # forward() matches the reference exactly: returns the constant 0
    P = mod.forward()
    assert P == 0

    print("KERNEL_OK")
</pallas_src>

<mosaic_0001>
module attributes {stable_mosaic.version = 11 : i64} {
  func.func @generalized_cubic_kernel(%arg0: i32, %arg1: i32, %arg2: memref<32x256xf32, #tpu.memory_space<vmem>>, %arg3: memref<32x256xf32, #tpu.memory_space<vmem>>, %arg4: memref<32x256xf32, #tpu.memory_space<vmem>>, %arg5: memref<32x256xf32, #tpu.memory_space<vmem>>, %arg6: memref<32x256xf32, #tpu.memory_space<vmem>>, %arg7: memref<32x256xf32, #tpu.memory_space<vmem>>, %arg8: memref<32x256xi8, #tpu.memory_space<vmem>>) attributes {dimension_semantics = [#tpu.dimension_semantics<parallel>, #tpu.dimension_semantics<parallel>], iteration_bounds = array<i64: 2, 1>, scalar_prefetch = 0 : i64, scratch_operands = 0 : i64, tpu.core_type = #tpu.core_type<tc>, window_params = [{transform_indices = @transform_0, window_bounds = array<i64: 32, 256>}, {transform_indices = @transform_1, window_bounds = array<i64: 32, 256>}, {transform_indices = @transform_2, window_bounds = array<i64: 32, 256>}, {transform_indices = @transform_3, window_bounds = array<i64: 32, 256>}, {transform_indices = @transform_4, window_bounds = array<i64: 32, 256>}, {transform_indices = @transform_5, window_bounds = array<i64: 32, 256>}, {transform_indices = @transform_6, window_bounds = array<i64: 32, 256>}]} {
    %c0 = arith.constant 0 : index
    %c0_0 = arith.constant 0 : index
    %0 = vector.load %arg2[%c0, %c0_0] : memref<32x256xf32, #tpu.memory_space<vmem>>, vector<32x256xf32>
    %cst = arith.constant 1.4545455 : f32
    %1 = vector.broadcast %cst : f32 to vector<32x256xf32>
    %2 = arith.divf %0, %1 : vector<32x256xf32>
    %c0_1 = arith.constant 0 : index
    %c0_2 = arith.constant 0 : index
    %3 = vector.load %arg3[%c0_1, %c0_2] : memref<32x256xf32, #tpu.memory_space<vmem>>, vector<32x256xf32>
    %cst_3 = arith.constant 1.4545455 : f32
    %4 = vector.broadcast %cst_3 : f32 to vector<32x256xf32>
    %5 = arith.divf %3, %4 : vector<32x256xf32>
    %6 = arith.mulf %2, %2 : vector<32x256xf32>
    %7 = arith.mulf %5, %5 : vector<32x256xf32>
    %8 = arith.addf %6, %7 : vector<32x256xf32>
    %c0_4 = arith.constant 0 : index
    %c0_5 = arith.constant 0 : index
    %9 = vector.load %arg4[%c0_4, %c0_5] : memref<32x256xf32, #tpu.memory_space<vmem>>, vector<32x256xf32>
    tpu.vector_store %arg4[%c0_4, %c0_5], %2 {strides = array<i32>} : memref<32x256xf32, #tpu.memory_space<vmem>>, vector<32x256xf32>,
    %c0_6 = arith.constant 0 : index
    %c0_7 = arith.constant 0 : index
    %10 = vector.load %arg5[%c0_6, %c0_7] : memref<32x256xf32, #tpu.memory_space<vmem>>, vector<32x256xf32>
    tpu.vector_store %arg5[%c0_6, %c0_7], %5 {strides = array<i32>} : memref<32x256xf32, #tpu.memory_space<vmem>>, vector<32x256xf32>,
    %11 = math.sqrt %8 : vector<32x256xf32>
    %c0_8 = arith.constant 0 : index
    %c0_9 = arith.constant 0 : index
    %12 = vector.load %arg6[%c0_8, %c0_9] : memref<32x256xf32, #tpu.memory_space<vmem>>, vector<32x256xf32>
    tpu.vector_store %arg6[%c0_8, %c0_9], %11 {strides = array<i32>} : memref<32x256xf32, #tpu.memory_space<vmem>>, vector<32x256xf32>,
    %13 = math.absf %2 : vector<32x256xf32>
    %14 = math.absf %5 : vector<32x256xf32>
    %15 = arith.maximumf %13, %14 : vector<32x256xf32>
    %16 = arith.minimumf %13, %14 : vector<32x256xf32>
    %cst_10 = arith.constant 0.000000e+00 : f32
    %17 = vector.broadcast %cst_10 : f32 to vector<32x256xf32>
    %18 = arith.cmpf ogt, %15, %17 : vector<32x256xf32>
    %cst_11 = arith.constant 1.000000e+00 : f32
    %19 = vector.broadcast %cst_11 : f32 to vector<32x256xf32>
    %20 = arith.select %18, %15, %19 : vector<32x256xi1>, vector<32x256xf32>
    %cst_12 = arith.constant 0.000000e+00 : f32
    %21 = vector.broadcast %cst_12 : f32 to vector<32x256xf32>
    %22 = arith.cmpf ogt, %15, %21 : vector<32x256xf32>
    %23 = tpu.reciprocal %20 {approx = true} : vector<32x256xf32> -> vector<32x256xf32>
    %24 = arith.mulf %16, %23 : vector<32x256xf32>
    %cst_13 = arith.constant 0.000000e+00 : f32
    %25 = vector.broadcast %cst_13 : f32 to vector<32x256xf32>
    %26 = arith.select %22, %24, %25 : vector<32x256xi1>, vector<32x256xf32>
    %27 = arith.mulf %26, %26 : vector<32x256xf32>
    %cst_14 = arith.constant 2.083510e-02 : f32
    %28 = vector.broadcast %cst_14 : f32 to vector<32x256xf32>
    %29 = arith.mulf %28, %27 : vector<32x256xf32>
    %cst_15 = arith.constant 8.513300e-02 : f32
    %30 = vector.broadcast %cst_15 : f32 to vector<32x256xf32>
    %31 = arith.subf %29, %30 : vector<32x256xf32>
    %32 = arith.mulf %31, %27 : vector<32x256xf32>
    %cst_16 = arith.constant 1.801410e-01 : f32
    %33 = vector.broadcast %cst_16 : f32 to vector<32x256xf32>
    %34 = arith.addf %32, %33 : vector<32x256xf32>
    %35 = arith.mulf %34, %27 : vector<32x256xf32>
    %cst_17 = arith.constant 0.330299497 : f32
    %36 = vector.broadcast %cst_17 : f32 to vector<32x256xf32>
    %37 = arith.subf %35, %36 : vector<32x256xf32>
    %38 = arith.mulf %37, %27 : vector<32x256xf32>
    %cst_18 = arith.constant 9.998660e-01 : f32
    %39 = vector.broadcast %cst_18 : f32 to vector<32x256xf32>
    %40 = arith.addf %38, %39 : vector<32x256xf32>
    %41 = arith.mulf %40, %26 : vector<32x256xf32>
    %42 = arith.cmpf ogt, %14, %13 : vector<32x256xf32>
    %cst_19 = arith.constant 1.57079637 : f32
    %43 = vector.broadcast %cst_19 : f32 to vector<32x256xf32>
    %44 = arith.subf %43, %41 : vector<32x256xf32>
    %45 = arith.select %42, %44, %41 : vector<32x256xi1>, vector<32x256xf32>
    %cst_20 = arith.constant 0.000000e+00 : f32
    %46 = vector.broadcast %cst_20 : f32 to vector<32x256xf32>
    %47 = arith.cmpf olt, %2, %46 : vector<32x256xf32>
    %cst_21 = arith.constant 3.14159274 : f32
    %48 = vector.broadcast %cst_21 : f32 to vector<32x256xf32>
    %49 = arith.subf %48, %45 : vector<32x256xf32>
    %50 = arith.select %47, %49, %45 : vector<32x256xi1>, vector<32x256xf32>
    %cst_22 = arith.constant 0.000000e+00 : f32
    %51 = vector.broadcast %cst_22 : f32 to vector<32x256xf32>
    %52 = arith.cmpf olt, %5, %51 : vector<32x256xf32>
    %cst_23 = arith.constant 0.000000e+00 : f32
    %53 = vector.broadcast %cst_23 : f32 to vector<32x256xf32>
    %54 = arith.subf %53, %50 : vector<32x256xf32>
    %55 = arith.select %52, %54, %50 : vector<32x256xi1>, vector<32x256xf32>
    %c0_24 = arith.constant 0 : index
    %c0_25 = arith.constant 0 : index
    %56 = vector.load %arg7[%c0_24, %c0_25] : memref<32x256xf32, #tpu.memory_space<vmem>>, vector<32x256xf32>
    tpu.vector_store %arg7[%c0_24, %c0_25], %55 {strides = array<i32>} : memref<32x256xf32, #tpu.memory_space<vmem>>, vector<32x256xf32>,
    %cst_26 = arith.constant 1.000000e+00 : f32
    %57 = vector.broadcast %cst_26 : f32 to vector<32x256xf32>
    %58 = arith.cmpf ole, %8, %57 : vector<32x256xf32>
    %59 = arith.extui %58 : vector<32x256xi1> to vector<32x256xi8>
    %c0_27 = arith.constant 0 : index
    %c0_28 = arith.constant 0 : index
    %60 = vector.load %arg8[%c0_27, %c0_28] : memref<32x256xi8, #tpu.memory_space<vmem>>, vector<32x256xi8>
    tpu.vector_store %arg8[%c0_27, %c0_28], %59 {strides = array<i32>} : memref<32x256xi8, #tpu.memory_space<vmem>>, vector<32x256xi8>,
    return
  }
  func.func @transform_0(%arg0: i32, %arg1: i32) -> (i32, i32) {
    %c0_i32 = arith.constant 0 : i32
    return %arg0, %arg1 : i32, i32
  }
  func.func @transform_1(%arg0: i32, %arg1: i32) -> (i32, i32) {
    %c0_i32 = arith.constant 0 : i32
    return %arg0, %arg1 : i32, i32
  }
  func.func @transform_2(%arg0: i32, %arg1: i32) -> (i32, i32) {
    %c0_i32 = arith.constant 0 : i32
    return %arg0, %arg1 : i32, i32
  }
  func.func @transform_3(%arg0: i32, %arg1: i32) -> (i32, i32) {
    %c0_i32 = arith.constant 0 : i32
    return %arg0, %arg1 : i32, i32
  }
  func.func @transform_4(%arg0: i32, %arg1: i32) -> (i32, i32) {
    %c0_i32 = arith.constant 0 : i32
    return %arg0, %arg1 : i32, i32
  }
  func.func @transform_5(%arg0: i32, %arg1: i32) -> (i32, i32) {
    %c0_i32 = arith.constant 0 : i32
    return %arg0, %arg1 : i32, i32
  }
  func.func @transform_6(%arg0: i32, %arg1: i32) -> (i32, i32) {
    %c0_i32 = arith.constant 0 : i32
    return %arg0, %arg1 : i32, i32
  }
}

</mosaic_0001>

<bundles_post_ra>
// kernel: tpu_custom_call.1
= control target key start
LH: loop header
LB: loop body
LE: loop exit
PB: predicated region body
PF: predicated region fallthrough
CT: control target
= control target key end

     0   :  { %s2546_s0 = inlined_call_operand.hbm [shape: f32[64,256], index: 0, kind: input, shape index: {}]   ;;  %s2547_s1 = inlined_call_operand.hbm [shape: f32[64,256], index: 1, kind: input, shape index: {}]   ;;  %s2548_s2 = inlined_call_operand.hbm [shape: f32[64,256], index: 2, kind: output, shape index: {0}]   ;;  %s2549_s3 = inlined_call_operand.hbm [shape: f32[64,256], index: 3, kind: output, shape index: {1}]   ;;  %s2550_s4 = inlined_call_operand.hbm [shape: f32[64,256], index: 4, kind: output, shape index: {2}]   ;;  %s2551_s5 = inlined_call_operand.hbm [shape: f32[64,256], index: 5, kind: output, shape index: {3}]   ;;  %s2552_s6 = inlined_call_operand.hbm [shape: s8[64,256], index: 6, kind: output, shape index: {4}]  }
   0x1   :  { %2568 = sst [smem:[#allocation31_spill]] %s2546_s0 }
   0x2   :  { %12 = vsyncpa [#allocation3], 0 }
   0x3   :  { %14 = vsyncpa [#allocation3 + $0x1], 0 }
   0x4   :  { %15 = vsyncpa [#allocation6], 0 }
   0x5   :  { %17 = vsyncpa [#allocation6 + $0x1], 0 }
   0x6   :  { %18 = vsyncpa [#allocation4], 0 }
   0x7   :  { %20 = vsyncpa [#allocation4 + $0x1], 0 }
   0x8   :  { %21 = vsyncpa [#allocation9], 0 }
   0x9   :  { %23 = vsyncpa [#allocation9 + $0x1], 0 }
   0xa   :  { %24 = vsyncpa [#allocation12], 0 }
   0xb   :  { %26 = vsyncpa [#allocation12 + $0x1], 0  ;;  %s1631_s21 = smov 0   ;;  %s1633_s22 = smov 0  }
   0xc   :  { %s1635_s23 = smov 0   ;;  %s1637_s24 = smov 0  }
   0xd   :  { %s1639_s25 = smov 0   ;;  %s1641_s26 = smov 0  }
   0xe LB: > { %2569 = sst [smem:[#allocation19_spill]] %s1570_s23  ;;  %s1662_s27 = sadd.s32 4294967295, %s1582_s26   ;;  %s1582_s26 = sphi %s1641_s26, %s32_s26   ;;  %s1578_s25 = sphi %s1639_s25, %s2612_s25   ;;  %s1574_s24 = sphi %s1637_s24, %s2611_s24   ;;  %s1570_s23 = sphi %s1635_s23, %s2607_s23   ;;  %s1566_s22 = sphi %s1633_s22, %s2610_s22   ;;  %s1562_s21 = sphi %s1631_s21, %s2609_s21  }
   0xf   : > { %s2553_s28 = sadd.s32 4294967294, %s1582_s26   ;;  %s44_s29 = sadd.s32 1, %s1578_s25 }
  0x10   : > { %s53_s30 = sadd.s32 1, %s1570_s23  ;;  %p46_p0 = scmp.ge.s32.totalorder %s44_s29, 2 }
  0x11   : > { %p60_p1 = scmp.ne.s32.totalorder %s1570_s23, %s1566_s22  ;;  %p61_p2 = scmp.eq.s32.totalorder %s1582_s26, 0 }
  0x12   : > { %p66_p3 = scmp.ne.s32.totalorder %s1566_s22, %s1562_s21  ;;  %s2614_s29 = smov (%p46_p0, %s44_s29), 0 }
  0x13   : > { %2570 = sst [smem:[#allocation20_spill]] %s2614_s29  ;;  %p1674_p4 = por %p61_p2, %p60_p1 }
  0x14   : > { %p67_p5 = scmp.eq.s32.totalorder %s1662_s27, 0  ;;  %s48_s8 = ssub.s32 %s1578_s25, %s2614_s29 }
  0x15   : > { %p120_p6 = scmp.eq.s32.totalorder %s1662_s27, 1  ;;  %p51_p7 = scmp.eq.s32.totalorder %s48_s8, 0 }
  0x16   : > { %p1682_p8 = por %p67_p5, %p66_p3  ;;  %p126_p10 = scmp.eq.s32.totalorder %s2553_s28, 1 }
  0x17   : > { %p1686_p9 = por %p120_p6, %p60_p1  ;;  %p1139_p12 = scmp.ge.s32.totalorder %s1582_s26, 2 }
  0x18   : > { %s1693_s11 = scalar_select %p51_p7, %s1570_s23, %s53_s30  }
  0x19   : > { %p1695_p11 = por %p126_p10, %p66_p3  ;;  %p1243_p13 = scmp.lt.s32.totalorder %s1582_s26, 2 }
  0x1a   : > { %2574 = sst [smem:[#allocation21_spill]] %s1693_s11  ;;  %s1702_s13 = sand.u32 1, %s1570_s23  }
  0x1b   : > { %s2575_s12 = scalar_select %p1695_p11, 1, 0 }
  0x1c   : > { %s2554_s14 = sshll.u32 %s1702_s13, 6  ;;  %s1194_s15 = sshll.u32 %s1578_s25, 10 }
  0x1d   : > { %2576 = sst [smem:[#allocation22_spill]] %s2575_s12  ;;  %s262_s19 = scalar_lea.vmem [#allocation2], %s2554_s14 }
  0x1e   : > { %s2577_s0 = sld [smem:[#allocation31_spill]]  ;;  %s272_s20 = sshll.u32 %s262_s19, 4  ;;  %s273_s20 = int_to_ptr.vmem [resolvable:$true] %s272_s20 }
  0x1f   : > { %p1715_p0 = pnand %p1243_p13, %p1674_p4  ;;  %p1148_p1 = scmp.ge.s32.totalorder %s1582_s26, 1 }
  0x20   : > { %s259_s8 = scalar_lea.sflag [#allocation3], %s1702_s13  ;;  %s1343_s28 = scalar_lea.vmem %s273_s20, 1024 }
  0x21   : > { %p1332_p2 = pneg %p1715_p0  ;;  %p1344_p3 = scmp.ne.s32.totalorder %s273_s20, %s1343_s28 }
  0x22   : > { %s1584_s16 = smov [#allocation2]  }
  0x23   : > { %p1346_p5 = pnand %p1344_p3, %p1332_p2  ;;  %s1348_s17 = sshll.u32 %s1584_s16, 4  ;;  %s1349_s17 = int_to_ptr.vmem [resolvable:$false] %s1348_s17 }
  0x24   : > { %s271_s18 = scalar_lea.hbm %s2577_s0, %s1194_s15  ;;  %s1350_s7 = scalar_lea.vmem %s1349_s17, 2048 }
  0x25   : > { %p1347_p6 = pneg %p1346_p5  ;;  %p1351_p4 = scmp.lt.s32.totalorder %s273_s20, %s1349_s17 }
  0x26   : > { %p1352_p7 = scmp.lt.s32.totalorder %s1350_s7, %s1343_s28 }
  0x28   : > { %p1353_p10 = por %p1352_p7, %p1351_p4 }
  0x2a   : > { %p1354_p13 = pnand %p1353_p10, %p1347_p6 }
  0x2c   : > { %1357 = shalt.err (!%p1354_p13)
}
  0x2d   : > { %s1585_s19 = smov 256   ;;  %s1586_s14 = smov 16  }
  0x2e   : > { %1223 = dma.hbm_to_vmem [thread:$0]  (!%p1715_p0), %s271_s18, 1024, %s273_s20, %s259_s8, %s1585_s19, %s1585_s19, %s1586_s14  }
  0x2f   : > { %p304_p3 = scmp.lt.s32.totalorder %s1582_s26, 3  ;;  %s295_s28 = scalar_lea.hbm %s2547_s1, %s1194_s15 }
  0x30   : > { %s2580_s7 = sshll.u32 %s1702_s13, 6  ;;  %s283_s23 = scalar_lea.sflag [#allocation6], %s1702_s13 }
  0x31   : > { %p1736_p5 = pnand %p1148_p1, %p304_p3  ;;  %s286_s29 = scalar_lea.vmem [#allocation5], %s2580_s7 }
  0x32   : > { %s296_s11 = sshll.u32 %s286_s29, 4  ;;  %s1587_s18 = smov [#allocation5]   ;;  %s297_s11 = int_to_ptr.vmem [resolvable:$true] %s296_s11 }
  0x33   : > { %s1371_s12 = scalar_lea.vmem %s297_s11, 1024  ;;  %s1376_s20 = sshll.u32 %s1587_s18, 4  ;;  %s1377_s20 = int_to_ptr.vmem [resolvable:$false] %s1376_s20 }
  0x34   : > { %p1372_p6 = scmp.ne.s32.totalorder %s297_s11, %s1371_s12  ;;  %s1378_s0 = scalar_lea.vmem %s1377_s20, 2048 }
  0x35   : > { %p1379_p10 = scmp.lt.s32.totalorder %s297_s11, %s1377_s20  ;;  %p1380_p1 = scmp.lt.s32.totalorder %s1378_s0, %s1371_s12 }
  0x36   : > { %p1374_p4 = pnand %p1372_p6, %p1332_p2 }
  0x37   : > { %p1381_p13 = por %p1380_p1, %p1379_p10 }
  0x38   : > { %p1375_p7 = pneg %p1374_p4 }
  0x3a   : > { %p1382_p3 = pnand %p1381_p13, %p1375_p7 }
  0x3c   : > { %1385 = shalt.err (!%p1382_p3)
}
  0x3d   : > { %1226 = dma.hbm_to_vmem [thread:$0]  (!%p1715_p0), %s295_s28, 1024, %s297_s11, %s283_s23, %s1585_s19, %s1585_s19, %s1586_s14  }
  0x3e   : > { %308 = sbr.rel (%p1736_p5) target bundleno = 259 (0x103), region = 28 }
  0x43   : > { %s1751_s29 = sand.u32 1, %s1566_s22  }
  0x44   : > { %s1754_s13 = sshll.u32 %s1751_s29, 6  ;;  %s311_s15 = scalar_lea.sflag [#allocation3], %s1751_s29 }
  0x45   : > { %s1758_s12 = scalar_lea.vmem [#allocation2], %s1754_s13 }
  0x46   : > { %1541 = dma.done.wait (%p1682_p8), %s311_s15, 1024  }
  0x47   : > { %1543 = vsyncadd (%p1682_p8), %s311_s15, 4294966272  ;;  %s320_s23 = scalar_lea.sflag [#allocation6], %s1751_s29  ;;  %s323_s11 = scalar_lea.vmem [#allocation5], %s1754_s13 }
  0x48   : > { %1545 = dma.done.wait (%p1682_p8), %s320_s23, 1024  }
  0x49   : > { %1547 = vsyncadd (%p1682_p8), %s320_s23, 4294966272  ;;  %s1771_s14 = scalar_lea.vmem [#allocation8], %s1754_s13  ;;  %v409_v0 = vld [vmem:[%s323_s11] sm:$0xff]  ;;  %v410_v1 = vld [vmem:[%s323_s11 + $0x8] sm:$0xff]  ;;  %s2558_s8 = sand.u32 1, %s1662_s27  }
  0x4a   : > { %s835_s30 = sshll.u32 %s1771_s14, 4  ;;  %v411_v2 = vld [vmem:[%s323_s11 + $0x10] sm:$0xff]  ;;  %v1775_v3 = vmul.f32 0.6875, %v409_v0  ;;  %v1777_v4 = vmul.f32 0.6875, %v410_v1  ;;  %v412_v6 = vld [vmem:[%s323_s11 + $0x18] sm:$0xff]  ;;  %v413_v7 = vld [vmem:[%s323_s11 + $0x20] sm:$0xff]  ;;  %s1781_s30 = int_to_ptr.vmem [resolvable:$true] %s835_s30 }
  0x4b   : > { %v1779_v5 = vmul.f32 0.6875, %v411_v2  ;;  %v414_v8 = vld [vmem:[%s323_s11 + $0x28] sm:$0xff]  ;;  %v1783_v9 = vmul.f32 0.6875, %v412_v6  ;;  %v1785_v10 = vmul.f32 0.6875, %v413_v7  ;;  %v415_v12 = vld [vmem:[%s323_s11 + $0x30] sm:$0xff]  ;;  %v416_v13 = vld [vmem:[%s323_s11 + $0x38] sm:$0xff] }
  0x4c   : > { %v1787_v11 = vmul.f32 0.6875, %v414_v8  ;;  %v392_v14 = vld [vmem:[%s1758_s12] sm:$0xff]  ;;  %457 = vst [vmem:[%s1771_s14] sm:$0xff] %v1775_v3  ;;  %458 = vst [vmem:[%s1771_s14 + $0x8] sm:$0xff] %v1777_v4  ;;  %v1796_v15 = vmul.f32 0.6875, %v415_v12  ;;  %v393_v16 = vld [vmem:[%s1758_s12 + $0x8] sm:$0xff]  ;;  %s1800_s9 = sshll.u32 %s1574_s24, 10 }
  0x4d   : > { %459 = vst [vmem:[%s1771_s14 + $0x10] sm:$0xff] %v1779_v5  ;;  %460 = vst [vmem:[%s1771_s14 + $0x18] sm:$0xff] %v1783_v9  ;;  %v1808_v17 = vmul.f32 0.6875, %v416_v13  ;;  %v394_v18 = vld [vmem:[%s1758_s12 + $0x10] sm:$0xff]  ;;  %v1813_v19 = vmul.f32 0.6875, %v392_v14  ;;  %s1822_s28 = scalar_lea.hbm %s2549_s3, %s1800_s9  ;;  %v1826_v21 = vmul.f32 0.6875, %v393_v16 }
  0x4e   : > { %2581 = vst [vmem:[#allocation23_spill] sm:$0xff] %v1796_v15  ;;  %461 = vst [vmem:[%s1771_s14 + $0x20] sm:$0xff] %v1785_v10  ;;  %v1816_v20 = vand.u32 2147483647, %v1775_v3  ;;  %v1829_v22 = vand.u32 2147483647, %v1777_v4 }
  0x4f   : > { %462 = vst [vmem:[%s1771_s14 + $0x28] sm:$0xff] %v1787_v11  ;;  %2582 = vst [vmem:[#allocation24_spill] sm:$0xff] %v1808_v17  ;;  %v1832_v23 = vand.u32 2147483647, %v1813_v19  ;;  %v1834_v24 = vmul.f32 0.6875, %v394_v18  ;;  %s1837_s17 = scalar_lea.vmem [#allocation7], %s1754_s13 }
  0x50   : > { %463 = vst [vmem:[%s1771_s14 + $0x30] sm:$0xff] %v1796_v15  ;;  %464 = vst [vmem:[%s1771_s14 + $0x38] sm:$0xff] %v1808_v17  ;;  %s1843_s7 = scalar_lea.sflag [#allocation9], %s2558_s8  ;;  %s1386_s18 = scalar_lea.vmem %s1781_s30, 1024 }
  0x51   : > { %449 = vst [vmem:[%s1837_s17] sm:$0xff] %v1813_v19  ;;  %p1387_p8 = scmp.ne.s32.totalorder %s1781_s30, %s1386_s18  ;;  %s1588_s20 = smov [#allocation8]  }
  0x52   : > { %s1390_s0 = sshll.u32 %s1588_s20, 4  ;;  %s1391_s0 = int_to_ptr.vmem [resolvable:$false] %s1390_s0 }
  0x53   : > { %p1388_p0 = pnand %p1387_p8, %p1686_p9  ;;  %s1392_s15 = scalar_lea.vmem %s1391_s0, 2048 }
  0x54   : > { %p1393_p5 = scmp.lt.s32.totalorder %s1781_s30, %s1391_s0  ;;  %p1394_p6 = scmp.lt.s32.totalorder %s1392_s15, %s1386_s18 }
  0x55   : > { %p1389_p2 = pneg %p1388_p0 }
  0x56   : > { %p1395_p4 = por %p1394_p6, %p1393_p5 }
  0x58   : > { %p1396_p7 = pnand %p1395_p4, %p1389_p2 }
  0x5a   : > { %1399 = shalt.err (!%p1396_p7)
}
  0x5b   : > { %s1400_s23 = scalar_lea.hbm %s1822_s28, 1024  ;;  %s1404_s19 = scalar_lea.hbm %s2549_s3, 2048 }
  0x5c   : > { %p1401_p10 = scmp.ne.s32.totalorder %s1822_s28, %s1400_s23  ;;  %p1405_p3 = scmp.lt.s32.totalorder %s1822_s28, %s2549_s3 }
  0x5d   : > { %p1406_p8 = scmp.lt.s32.totalorder %s1404_s19, %s1400_s23 }
  0x5e   : > { %p1402_p1 = pnand %p1401_p10, %p1686_p9 }
  0x5f   : > { %p1407_p0 = por %p1406_p8, %p1405_p3 }
  0x60   : > { %p1403_p13 = pneg %p1402_p1 }
  0x62   : > { %p1408_p2 = pnand %p1407_p0, %p1403_p13 }
  0x64   : > { %1411 = shalt.err (!%p1408_p2)
}
  0x65   : > { %s1589_s18 = smov 256   ;;  %s1590_s0 = smov 16   ;;  %v1870_v25 = vand.u32 2147483647, %v1826_v21  ;;  %450 = vst [vmem:[%s1837_s17 + $0x8] sm:$0xff] %v1826_v21  ;;  %v1876_v26 = vmax.f32 %v1832_v23, %v1816_v20  ;;  %v395_v28 = vld [vmem:[%s1758_s12 + $0x18] sm:$0xff]  ;;  %v433_v42 = vmul.f32 %v1775_v3, %v1775_v3  ;;  %v434_v43 = vmul.f32 %v1777_v4, %v1777_v4 }
  0x66   : > { %1211 = dma.vmem_to_hbm [thread:$0]  (%p1686_p9), %s1781_s30, 1024, %s1822_s28, %s1843_s7, %s1589_s18, %s1589_s18, %s1590_s0   ;;  %v1879_v27 = vand.u32 2147483647, %v1779_v5  ;;  %v1890_v30 = vand.u32 2147483647, %v1834_v24  ;;  %v1896_v32 = vmul.f32 0.6875, %v395_v28  ;;  %v435_v46 = vmul.f32 %v1779_v5, %v1779_v5 }
  0x67   : > { %451 = vst [vmem:[%s1837_s17 + $0x10] sm:$0xff] %v1834_v24  ;;  %v1886_v29 = vmax.f32 %v1870_v25, %v1829_v22  ;;  %vm561_vm0 = vcmp.gt.f32.partialorder %v1876_v26, 0.0  ;;  %v396_v35 = vld [vmem:[%s1758_s12 + $0x20] sm:$0xff]  ;;  %v1913_v37 = vand.u32 2147483647, %v1783_v9  ;;  %v397_v40 = vld [vmem:[%s1758_s12 + $0x28] sm:$0xff]  ;;  %v436_v50 = vmul.f32 %v1783_v9, %v1783_v9  ;;  %s2026_s15 = scalar_lea.hbm %s2548_s2, %s1800_s9 }
  0x68   : > { %v569_v31 = vsel %vm561_vm0, %v1876_v26, 1.0  ;;  %v1903_v34 = vmax.f32 %v1890_v30, %v1879_v27  ;;  %452 = vst [vmem:[%s1837_s17 + $0x18] sm:$0xff] %v1896_v32  ;;  %v1910_v36 = vand.u32 2147483647, %v1896_v32  ;;  %v1918_v39 = vmul.f32 0.6875, %v396_v35  ;;  %v398_v49 = vld [vmem:[%s1758_s12 + $0x30] sm:$0xff] }
  0x69   : > { %vm562_vm1 = vcmp.gt.f32.partialorder %v1886_v29, 0.0  ;;  %1298 = vrcp.f32 %v569_v31  ;;  %v1933_v45 = vand.u32 2147483647, %v1785_v10  ;;  %v1940_v47 = vmul.f32 0.6875, %v397_v40  ;;  %s816_s30 = sshll.u32 %s1837_s17, 4  ;;  %v399_v0 = vld [vmem:[%s1758_s12 + $0x38] sm:$0xff]  ;;  %s2011_s30 = int_to_ptr.vmem [resolvable:$true] %s816_s30 }
  0x6a   : > { %v570_v33 = vsel %vm562_vm1, %v1886_v29, 1.0  ;;  %vm563_vm2 = vcmp.gt.f32.partialorder %v1903_v34, 0.0  ;;  %v1923_v41 = vmax.f32 %v1910_v36, %v1913_v37  ;;  %v1930_v44 = vand.u32 2147483647, %v1918_v39  ;;  %453 = vst [vmem:[%s1837_s17 + $0x20] sm:$0xff] %v1918_v39  ;;  %s780_s23 = scalar_lea.sflag [#allocation4], %s1751_s29 }
  0x6b   : > { %1300 = vrcp.f32 %v570_v33  ;;  %v571_v38 = vsel %vm563_vm2, %v1903_v34, 1.0  ;;  %v1943_v48 = vand.u32 2147483647, %v1787_v11  ;;  %v1950_v51 = vmul.f32 %v1785_v10, %v1785_v10  ;;  %454 = vst [vmem:[%s1837_s17 + $0x28] sm:$0xff] %v1940_v47  ;;  %s1412_s11 = scalar_lea.vmem %s2011_s30, 1024  ;;  %s1591_s14 = smov [#allocation7]  }
  0x6c   : > { %1302 = vrcp.f32 %v571_v38  ;;  %vm564_vm3 = vcmp.gt.f32.partialorder %v1923_v41, 0.0  ;;  %v1957_v53 = vmax.f32 %v1930_v44, %v1933_v45  ;;  %v1961_v54 = vmul.f32 %v1787_v11, %v1787_v11  ;;  %p1413_p5 = scmp.ne.s32.totalorder %s2011_s30, %s1412_s11  ;;  %s1416_s19 = sshll.u32 %s1591_s14, 4  ;;  %s1417_s19 = int_to_ptr.vmem [resolvable:$false] %s1416_s19 }
  0x6d   : > { %v572_v52 = vsel %vm564_vm3, %v1923_v41, 1.0  ;;  %v425_v55 = vmul.f32 %v1813_v19, %v1813_v19  ;;  %v1966_v56 = vand.u32 2147483647, %v1940_v47  ;;  %v1972_v57 = vmul.f32 %v1796_v15, %v1796_v15  ;;  %p1419_p7 = scmp.lt.s32.totalorder %s2011_s30, %s1417_s19 }
  0x6e   : > { %1304 = vrcp.f32 %v572_v52  ;;  %v426_v58 = vmul.f32 %v1826_v21, %v1826_v21  ;;  %vm565_vm4 = vcmp.gt.f32.partialorder %v1957_v53, 0.0  ;;  %v1977_v59 = vmul.f32 0.6875, %v398_v49  ;;  %p1414_p6 = pnand %p1413_p5, %p1686_p9 }
  0x6f   : > { %v1982_v60 = vmul.f32 %v1808_v17, %v1808_v17  ;;  %v553_v61 = vmin.f32 %v1832_v23, %v1816_v20  ;;  %v573_v62 = vsel %vm565_vm4, %v1957_v53, 1.0  ;;  %v1991_v63 = vmax.f32 %v1966_v56, %v1943_v48 }
  0x70   : > { %2583 = vst [vmem:[#allocation25_spill] sm:$0xff] %v1977_v59  ;;  %v554_v1 = vmin.f32 %v1870_v25, %v1829_v22  ;;  %v427_v2 = vmul.f32 %v1834_v24, %v1834_v24  ;;  %1306 = vrcp.f32 %v573_v62  ;;  %v1999_v6 = vand.u32 2147483647, %v1977_v59  ;;  %455 = vst [vmem:[%s1837_s17 + $0x30] sm:$0xff] %v1977_v59  ;;  %p1415_p4 = pneg %p1414_p6 }
  0x71   : > { %v2003_v7 = vadd.f32 %v433_v42, %v425_v55  ;;  %v428_v8 = vmul.f32 %v1896_v32, %v1896_v32  ;;  %vm566_vm5 = vcmp.gt.f32.partialorder %v1991_v63, 0.0  ;;  %v2009_v12 = vand.u32 2147483647, %v1796_v15 }
  0x72   : > { %v2013_v14 = vadd.f32 %v434_v43, %v426_v58  ;;  %v555_v16 = vmin.f32 %v1890_v30, %v1879_v27  ;;  %v574_v18 = vsel %vm566_vm5, %v1991_v63, 1.0  ;;  %v2020_v28 = vmul.f32 0.6875, %v399_v0 }
  0x73   : > { %1308 = vrcp.f32 %v574_v18  ;;  %v2030_v35 = vmax.f32 %v1999_v6, %v2009_v12  ;;  %v2033_v38 = vand.u32 2147483647, %v1808_v17  ;;  %v2035_v42 = vadd.f32 %v435_v46, %v427_v2 }
  0x74   : > { %2584 = vst [vmem:[#allocation26_spill] sm:$0xff] %v2020_v28  ;;  %v429_v43 = vmul.f32 %v1918_v39, %v1918_v39  ;;  %v2040_v49 = vand.u32 2147483647, %v2020_v28  ;;  %456 = vst [vmem:[%s1837_s17 + $0x38] sm:$0xff] %v2020_v28  ;;  %v2048_v55 = vadd.f32 %v436_v50, %v428_v8  ;;  %v556_v58 = vmin.f32 %v1910_v36, %v1913_v37  ;;  %s1418_s17 = scalar_lea.vmem %s1417_s19, 2048 }
  0x75   : > { %2585 = vst [vmem:[#allocation27_spill] sm:$0xff] %v2033_v38  ;;  %vm567_vm6 = vcmp.gt.f32.partialorder %v2030_v35, 0.0  ;;  %p1420_p10 = scmp.lt.s32.totalorder %s1418_s17, %s1412_s11 }
  0x76   : > { %v1299_v13 = vpop.eup %1298  ;;  %2586 = vst [vmem:[#allocation28_spill] sm:$0xff] %v2040_v49 }
  0x77   : > { %v585_v33 = vmul.f32 %v1299_v13, %v553_v61  ;;  %p1421_p1 = por %p1420_p10, %p1419_p7 }
  0x78   : > { %v1301_v31 = vpop.eup %1300 }
  0x79   : > { %v586_v40 = vmul.f32 %v1301_v31, %v554_v1  ;;  %v2046_v52 = vsel %vm561_vm0, %v585_v33, 0.0  ;;  %p1422_p13 = pnand %p1421_p1, %p1415_p4 }
  0x7b   : > { %1425 = shalt.err (!%p1422_p13)
}
  0x7c   : > { %s1426_s16 = scalar_lea.hbm %s2026_s15, 1024  ;;  %s1430_s28 = scalar_lea.hbm %s2548_s2, 2048 }
  0x7d   : > { %p1427_p3 = scmp.ne.s32.totalorder %s2026_s15, %s1426_s16  ;;  %p1431_p2 = scmp.lt.s32.totalorder %s2026_s15, %s2548_s2 }
  0x7e   : > { %p1432_p5 = scmp.lt.s32.totalorder %s1430_s28, %s1426_s16 }
  0x7f   : > { %p1428_p8 = pnand %p1427_p3, %p1686_p9 }
  0x80   : > { %p1433_p6 = por %p1432_p5, %p1431_p2 }
  0x81   : > { %p1429_p0 = pneg %p1428_p8 }
  0x83   : > { %p1434_p4 = pnand %p1433_p6, %p1429_p0 }
  0x85   : > { %1437 = shalt.err (!%p1434_p4)
}
  0x86   : > { %1210 = dma.vmem_to_hbm [thread:$0]  (%p1686_p9), %s2011_s30, 1024, %s2026_s15, %s780_s23, %s1589_s18, %s1589_s18, %s1590_s0   ;;  %v1303_v26 = vpop.eup %1302  ;;  %v601_v46 = vmul.f32 %v2046_v52, %v2046_v52  ;;  %v2081_v50 = vsel %vm562_vm1, %v586_v40, 0.0  ;;  %v430_v61 = vmul.f32 %v1940_v47, %v1940_v47  ;;  %v575_v62 = vsel %vm567_vm6, %v2030_v35, 1.0 }
  0x87   : > { %v2090_v0 = vmul.f32 %v2081_v50, %v2081_v50  ;;  %v587_v1 = vmul.f32 %v1303_v26, %v555_v16  ;;  %1310 = vrcp.f32 %v575_v62  ;;  %v2094_v2 = vmax.f32 %v2040_v49, %v2033_v38  ;;  %v1305_v33 = vpop.eup %1304  ;;  %s2257_s8 = scalar_lea.vmem [#allocation11], %s1754_s13  ;;  %s2282_s30 = scalar_lea.vmem [#allocation10], %s1754_s13 }
  0x88   : > { %v609_v29 = vmul.f32 0.0208351, %v601_v46  ;;  %v2097_v8 = vadd.f32 %v1950_v51, %v429_v43  ;;  %v431_v13 = vmul.f32 %v1977_v59, %v1977_v59  ;;  %1312 = vrsqrt.f32 %v2003_v7  ;;  %s1155_s13 = sshll.u32 %s1751_s29, 4  ;;  %s873_s29 = sshll.u32 %s2257_s8, 4  ;;  %s2375_s29 = int_to_ptr.vmem [resolvable:$true] %s873_s29 }
  0x89   : > { %v610_v18 = vmul.f32 0.0208351, %v2090_v0  ;;  %v2105_v31 = vsel %vm563_vm2, %v587_v1, 0.0  ;;  %v557_v16 = vmin.f32 %v1930_v44, %v1933_v45  ;;  %vm568_vm7 = vcmp.gt.f32.partialorder %v2094_v2, 0.0  ;;  %s376_s15 = scalar_lea.vmem [#allocation13], %s1155_s13  ;;  %s1205_s11 = sshll.u32 %s1574_s24, 8 }
  0x8a   : > { %v1156_v40 = vadd.f32 -0.085133, %v609_v29  ;;  %v2112_v51 = vmul.f32 %v2105_v31, %v2105_v31  ;;  %v2115_v43 = vadd.f32 %v1961_v54, %v430_v61  ;;  %v576_v34 = vsel %vm568_vm7, %v2094_v2, 1.0  ;;  %v1307_v61 = vpop.eup %1306  ;;  %s892_s23 = sshll.u32 %s376_s15, 4  ;;  %s2391_s17 = scalar_lea.hbm %s2551_s5, %s1800_s9  ;;  %s2397_s23 = int_to_ptr.vmem [resolvable:$true] %s892_s23 }
  0x8b   : > { %v1157_v26 = vadd.f32 -0.085133, %v610_v18  ;;  %v588_v62 = vmul.f32 %v1305_v33, %v556_v58  ;;  %v558_v1 = vmin.f32 %v1966_v56, %v1943_v48  ;;  %1314 = vrcp.f32 %v576_v34  ;;  %s2402_s12 = scalar_lea.hbm %s2552_s6, %s1205_s11  ;;  %s2603_s28 = sand.u32 1, %s1662_s27  }
  0x8c   : > { %2587 = vst [vmem:[#allocation29_spill] sm:$0xff] %v2115_v43  ;;  %v625_v17 = vmul.f32 %v1156_v40, %v601_v46  ;;  %v611_v29 = vmul.f32 0.0208351, %v2112_v51  ;;  %v2124_v15 = vadd.f32 %v1972_v57, %v431_v13  ;;  %v559_v54 = vmin.f32 %v1999_v6, %v2009_v12  ;;  %s2416_s14 = scalar_lea.sflag [#allocation12], %s2603_s28  ;;  %s1593_s13 = smov [#allocation11]  }
  0x8d   : > { %v626_v59 = vmul.f32 %v1157_v26, %v2090_v0  ;;  %v2131_v18 = vsel %vm564_vm3, %v588_v62, 0.0  ;;  %v2135_v58 = vmul.f32 %v2020_v28, %v2020_v28  ;;  %v560_v33 = vmin.f32 %v2040_v49, %v2033_v38  ;;  %v1309_v26 = vpop.eup %1308  ;;  %s1442_s11 = sshll.u32 %s1593_s13, 4  ;;  %s1443_s11 = int_to_ptr.vmem [resolvable:$false] %s1442_s11 }
  0x8e   : > { %2588 = vst [vmem:[#allocation30_spill] sm:$0xff] %v2124_v15  ;;  %v633_v40 = vadd.f32 0.180141, %v625_v17  ;;  %v1158_v57 = vadd.f32 -0.085133, %v611_v29  ;;  %v2141_v13 = vmul.f32 %v2131_v18, %v2131_v18  ;;  %v589_v34 = vmul.f32 %v1307_v61, %v557_v16  ;;  %p1445_p13 = scmp.lt.s32.totalorder %s2375_s29, %s1443_s11 }
  0x8f   : > { %v634_v15 = vadd.f32 0.180141, %v626_v59  ;;  %vm467_vm8 = vcmp.eq.f32.partialorder %v2003_v7, inf  ;;  %1316 = vrsqrt.f32 %v2013_v14  ;;  %vm681_vm9 = vcmp.gt.f32.partialorder %v1816_v20, %v1832_v23 }
  0x90   : > { %v641_v62 = vmul.f32 %v633_v40, %v601_v46  ;;  %v627_v28 = vmul.f32 %v1158_v57, %v2112_v51  ;;  %v612_v38 = vmul.f32 0.0208351, %v2141_v13  ;;  %v2150_v17 = vsel %vm565_vm4, %v589_v34, 0.0 }
  0x91   : > { %v642_v59 = vmul.f32 %v634_v15, %v2090_v0  ;;  %v2157_v16 = vmul.f32 %v2150_v17, %v2150_v17  ;;  %v590_v29 = vmul.f32 %v1309_v26, %v558_v1  ;;  %vm682_vm10 = vcmp.gt.f32.partialorder %v1829_v22, %v1870_v25 }
  0x92   : > { %v1164_v40 = vadd.f32 -0.3302995, %v641_v62  ;;  %v635_v57 = vadd.f32 0.180141, %v627_v28  ;;  %v1159_v53 = vadd.f32 -0.085133, %v612_v38  ;;  %1318 = vrsqrt.f32 %v2035_v42 }
  0x93   : > { %v1165_v34 = vadd.f32 -0.3302995, %v642_v59  ;;  %v613_v41 = vmul.f32 0.0208351, %v2157_v16  ;;  %v2166_v15 = vsel %vm566_vm5, %v590_v29, 0.0  ;;  %vm705_vm11 = vcmp.lt.f32.partialorder %v1813_v19, 0.0 }
  0x94   : > { %v1311_v1 = vpop.eup %1310  ;;  %v657_v26 = vmul.f32 %v1164_v40, %v601_v46  ;;  %v643_v62 = vmul.f32 %v635_v57, %v2112_v51  ;;  %v628_v28 = vmul.f32 %v1159_v53, %v2141_v13  ;;  %v2174_v38 = vmul.f32 %v2166_v15, %v2166_v15 }
  0x95   : > { %v1313_v59 = vpop.eup %1312  ;;  %v658_v61 = vmul.f32 %v1165_v34, %v2090_v0  ;;  %vm706_vm12 = vcmp.lt.f32.partialorder %v1826_v21, 0.0  ;;  %vm683_vm13 = vcmp.gt.f32.partialorder %v1879_v27, %v1890_v30  ;;  %v1160_v63 = vadd.f32 -0.085133, %v613_v41 }
  0x96   : > { %v591_v46 = vmul.f32 %v1311_v1, %v559_v54  ;;  %1320 = vrsqrt.f32 %v2048_v55  ;;  %v665_v29 = vadd.f32 0.999866, %v657_v26  ;;  %v1166_v40 = vadd.f32 -0.3302995, %v643_v62 }
  0x97   : > { %v636_v57 = vadd.f32 0.180141, %v628_v28  ;;  %v466_v53 = vmul.f32 %v1313_v59, %v2003_v7  ;;  %vm729_vm14 = vcmp.lt.f32.partialorder %v1775_v3, 0.0  ;;  %v666_v49 = vadd.f32 0.999866, %v658_v61 }
  0x98   : > { %v629_v43 = vmul.f32 %v1160_v63, %v2157_v16  ;;  %v614_v0 = vmul.f32 0.0208351, %v2174_v38  ;;  %v2187_v34 = vsel %vm567_vm6, %v591_v46, 0.0  ;;  %v1315_v41 = vpop.eup %1314  ;;  %v673_v54 = vmul.f32 %v665_v29, %v2046_v52 }
  0x99   : > { %vm730_vm15 = vcmp.lt.f32.partialorder %v1777_v4, 0.0  ;;  %v659_v1 = vmul.f32 %v1166_v40, %v2112_v51  ;;  %vm707_vm0 = vcmp.lt.f32.partialorder %v1834_v24, 0.0  ;;  %v644_v26 = vmul.f32 %v636_v57, %v2141_v13 }
  0x9a   : > { %v2196_v61 = vmul.f32 %v2187_v34, %v2187_v34  ;;  %v674_v62 = vmul.f32 %v666_v49, %v2081_v50  ;;  %vm684_vm1 = vcmp.gt.f32.partialorder %v1913_v37, %v1910_v36  ;;  %v637_v35 = vadd.f32 0.180141, %v629_v43 }
  0x9b   : > { %v1161_v28 = vadd.f32 -0.085133, %v614_v0  ;;  %v592_v52 = vmul.f32 %v1315_v41, %v560_v33  ;;  %v689_v59 = vsub.f32 1.5707964, %v673_v54  ;;  %v667_v63 = vadd.f32 0.999866, %v659_v1 }
  0x9c   : > { %v1167_v46 = vadd.f32 -0.3302995, %v644_v26  ;;  %v2204_v51 = vsel %vm467_vm8, %v2003_v7, %v466_v53  ;;  %vm469_vm2 = vcmp.eq.f32.partialorder %v2003_v7, 0.0  ;;  %v690_v29 = vsub.f32 1.5707964, %v674_v62  ;;  %v2211_v33 = vpop.eup %1316 }
  0x9d   : > { %vm731_vm3 = vcmp.lt.f32.partialorder %v1779_v5, 0.0  ;;  %v645_v49 = vmul.f32 %v637_v35, %v2157_v16  ;;  %v630_v50 = vmul.f32 %v1161_v28, %v2174_v38  ;;  %v615_v43 = vmul.f32 0.0208351, %v2196_v61 }
  0x9e   : > { %v697_v40 = vsel %vm681_vm9, %v689_v59, %v673_v54  ;;  %v675_v57 = vmul.f32 %v667_v63, %v2105_v31  ;;  %v660_v53 = vmul.f32 %v1167_v46, %v2141_v13  ;;  %vm708_vm4 = vcmp.lt.f32.partialorder %v1896_v32, 0.0 }
  0x9f   : > { %vm685_vm5 = vcmp.gt.f32.partialorder %v1933_v45, %v1930_v44  ;;  %v2223_v0 = vsel %vm568_vm7, %v592_v52, 0.0  ;;  %v713_v41 = vsub.f32 3.1415927, %v697_v40  ;;  %v698_v1 = vsel %vm682_vm10, %v690_v29, %v674_v62  ;;  %v1319_v2 = vpop.eup %1318 }
  0xa0   : > { %v1168_v20 = vadd.f32 -0.3302995, %v645_v49  ;;  %v638_v23 = vadd.f32 0.180141, %v630_v50  ;;  %v714_v54 = vsub.f32 3.1415927, %v698_v1  ;;  %v2230_v13 = vmul.f32 %v2223_v0, %v2223_v0 }
  0xa1   : > { %v691_v31 = vsub.f32 1.5707964, %v675_v57  ;;  %v668_v26 = vadd.f32 0.999866, %v660_v53  ;;  %vm474_vm6 = vcmp.eq.f32.partialorder %v2013_v14, inf  ;;  %vm481_vm8 = vcmp.eq.f32.partialorder %v2035_v42, inf }
  0xa2   : > { %v721_v35 = vsel %vm705_vm11, %v713_v41, %v697_v40  ;;  %vm732_vm7 = vcmp.lt.f32.partialorder %v1783_v9, 0.0  ;;  %v661_v22 = vmul.f32 %v1168_v20, %v2157_v16  ;;  %v646_v25 = vmul.f32 %v638_v23, %v2174_v38 }
  0xa3   : > { %v1162_v62 = vadd.f32 -0.085133, %v615_v43  ;;  %v737_v28 = vsub.f32 0.0, %v721_v35  ;;  %v722_v52 = vsel %vm706_vm12, %v714_v54, %v698_v1  ;;  %v699_v59 = vsel %vm683_vm13, %v691_v31, %v675_v57  ;;  %v1321_v29 = vpop.eup %1320 }
  0xa4   : > { %v676_v19 = vmul.f32 %v668_v26, %v2131_v18  ;;  %vm476_vm10 = vcmp.eq.f32.partialorder %v2013_v14, 0.0  ;;  %vm483_vm11 = vcmp.eq.f32.partialorder %v2035_v42, 0.0  ;;  %v738_v16 = vsub.f32 0.0, %v722_v52 }
  0xa5   : > { %v715_v63 = vsub.f32 3.1415927, %v699_v59  ;;  %v669_v46 = vadd.f32 0.999866, %v661_v22  ;;  %vm686_vm9 = vcmp.gt.f32.partialorder %v1943_v48, %v1966_v56  ;;  %v631_v21 = vmul.f32 %v1162_v62, %v2196_v61 }
  0xa6   : > { %vm488_vm12 = vcmp.eq.f32.partialorder %v2048_v55, inf  ;;  %v745_v27 = vsel %vm729_vm14, %v737_v28, %v721_v35  ;;  %v692_v30 = vsub.f32 1.5707964, %v676_v19  ;;  %vm733_vm13 = vcmp.lt.f32.partialorder %v1785_v10, 0.0 }
  0xa7   : > { %v1169_v18 = vadd.f32 -0.3302995, %v646_v25  ;;  %v616_v49 = vmul.f32 0.0208351, %v2230_v13  ;;  %753 = vst [vmem:[%s2257_s8] sm:$0xff] %v745_v27  ;;  %v746_v50 = vsel %vm730_vm15, %v738_v16, %v722_v52  ;;  %v723_v43 = vsel %vm707_vm0, %v715_v63, %v699_v59 }
  0xa8   : > { %v677_v3 = vmul.f32 %v669_v46, %v2150_v17  ;;  %v639_v40 = vadd.f32 0.180141, %v631_v21  ;;  %vm490_vm14 = vcmp.eq.f32.partialorder %v2048_v55, 0.0  ;;  %754 = vst [vmem:[%s2257_s8 + $0x8] sm:$0xff] %v746_v50  ;;  %v739_v57 = vsub.f32 0.0, %v723_v43 }
  0xa9   : > { %v700_v53 = vsel %vm684_vm1, %v692_v30, %v676_v19  ;;  %v662_v41 = vmul.f32 %v1169_v18, %v2174_v38  ;;  %vm710_vm15 = vcmp.lt.f32.partialorder %v1940_v47, 0.0  ;;  %v1163_v4 = vadd.f32 -0.085133, %v616_v49 }
  0xaa   : > { %v716_v24 = vsub.f32 3.1415927, %v700_v53  ;;  %v693_v1 = vsub.f32 1.5707964, %v677_v3  ;;  %v647_v17 = vmul.f32 %v639_v40, %v2196_v61  ;;  %v2589_v20 = vand.u32 2147483648, %v2003_v7 }
  0xab   : > { %v747_v54 = vsel %vm731_vm3, %v739_v57, %v723_v43  ;;  %v670_v36 = vadd.f32 0.999866, %v662_v41  ;;  %v632_v37 = vmul.f32 %v1163_v4, %v2230_v13  ;;  %v473_v38 = vmul.f32 %v2211_v33, %v2013_v14  ;;  %v2594_v43 = vld [vmem:[#allocation25_spill] sm:$0xff]  ;;  %v2596_v57 = vld [vmem:[#allocation28_spill] sm:$0xff] }
  0xac   : > { %v471_v23 = vsel %vm469_vm2, %v2589_v20, %v2204_v51  ;;  %755 = vst [vmem:[%s2257_s8 + $0x10] sm:$0xff] %v747_v54  ;;  %v724_v31 = vsel %vm708_vm4, %v716_v24, %v700_v53  ;;  %v701_v5 = vsel %vm685_vm5, %v693_v1, %v677_v3  ;;  %v1170_v51 = vadd.f32 -0.3302995, %v647_v17  ;;  %v2597_v53 = vld [vmem:[#allocation27_spill] sm:$0xff]  ;;  %v2599_v24 = vld [vmem:[#allocation26_spill] sm:$0xff]  ;;  %v2600_v17 = vld [vmem:[#allocation24_spill] sm:$0xff] }
  0xad   : > { %521 = vst [vmem:[%s2282_s30] sm:$0xff] %v471_v23  ;;  %v480_v26 = vmul.f32 %v1319_v2, %v2035_v42  ;;  %v740_v35 = vsub.f32 0.0, %v724_v31  ;;  %v717_v22 = vsub.f32 3.1415927, %v701_v5  ;;  %v678_v25 = vmul.f32 %v670_v36, %v2166_v15 }
  0xae   : > { %v640_v62 = vadd.f32 0.180141, %v632_v37  ;;  %v663_v33 = vmul.f32 %v1170_v51, %v2196_v61  ;;  %v475_v32 = vsel %vm474_vm6, %v2013_v14, %v473_v38  ;;  %v487_v45 = vmul.f32 %v1321_v29, %v2048_v55 }
  0xaf   : > { %v482_v44 = vsel %vm481_vm8, %v2035_v42, %v480_v26  ;;  %v748_v2 = vsel %vm732_vm7, %v740_v35, %v724_v31  ;;  %vm2590_vm0 = vcmp.lt.f32.partialorder %v1918_v39, 0.0  ;;  %v694_v28 = vsub.f32 1.5707964, %v678_v25 }
  0xb0   : > { %v725_v15 = vsel %vm2590_vm0, %v717_v22, %v701_v5  ;;  %v648_v61 = vmul.f32 %v640_v62, %v2230_v13  ;;  %756 = vst [vmem:[%s2257_s8 + $0x18] sm:$0xff] %v748_v2  ;;  %v671_v59 = vadd.f32 0.999866, %v663_v33  ;;  %v2591_v19 = vand.u32 2147483648, %v2013_v14 }
  0xb1   : > { %v741_v52 = vsub.f32 0.0, %v725_v15  ;;  %v2592_v63 = vand.u32 2147483648, %v2035_v42  ;;  %v702_v39 = vsel %vm686_vm9, %v694_v28, %v678_v25  ;;  %v489_v21 = vsel %vm488_vm12, %v2048_v55, %v487_v45 }
  0xb2   : > { %v478_v16 = vsel %vm476_vm10, %v2591_v19, %v475_v32  ;;  %v1171_v46 = vadd.f32 -0.3302995, %v648_v61  ;;  %v491_v29 = vand.u32 2147483648, %v2048_v55  ;;  %v718_v30 = vsub.f32 3.1415927, %v702_v39 }
  0xb3   : > { %v485_v9 = vsel %vm483_vm11, %v2592_v63, %v482_v44  ;;  %522 = vst [vmem:[%s2282_s30 + $0x8] sm:$0xff] %v478_v16  ;;  %v749_v27 = vsel %vm733_vm13, %v741_v52, %v725_v15  ;;  %v679_v18 = vmul.f32 %v671_v59, %v2187_v34  ;;  %1322 = vrsqrt.f32 %v2097_v8 }
  0xb4   : > { %523 = vst [vmem:[%s2282_s30 + $0x10] sm:$0xff] %v485_v9  ;;  %757 = vst [vmem:[%s2257_s8 + $0x20] sm:$0xff] %v749_v27  ;;  %vm734_vm1 = vcmp.lt.f32.partialorder %v1787_v11, 0.0  ;;  %vm687_vm2 = vcmp.gt.f32.partialorder %v2009_v12, %v1999_v6  ;;  %v664_v48 = vmul.f32 %v1171_v46, %v2230_v13  ;;  %v492_v56 = vsel %vm490_vm14, %v491_v29, %v489_v21  ;;  %v2593_v11 = vld [vmem:[#allocation29_spill] sm:$0xff]  ;;  %v2595_v13 = vld [vmem:[#allocation30_spill] sm:$0xff] }
  0xb5   : > { %v726_v10 = vsel %vm710_vm15, %v718_v30, %v702_v39  ;;  %v695_v49 = vsub.f32 1.5707964, %v679_v18  ;;  %v2341_v34 = vadd.f32 %v1982_v60, %v2135_v58  ;;  %524 = vst [vmem:[%s2282_s30 + $0x18] sm:$0xff] %v492_v56  ;;  %1324 = vrsqrt.f32 %v2593_v11  ;;  %v2598_v58 = vld [vmem:[#allocation23_spill] sm:$0xff] }
  0xb6   : > { %v742_v50 = vsub.f32 0.0, %v726_v10  ;;  %v672_v6 = vadd.f32 0.999866, %v664_v48  ;;  %vm711_vm3 = vcmp.lt.f32.partialorder %v2594_v43, 0.0  ;;  %1326 = vrsqrt.f32 %v2595_v13 }
  0xb7   : > { %v703_v12 = vsel %vm687_vm2, %v695_v49, %v679_v18  ;;  %vm688_vm4 = vcmp.gt.f32.partialorder %v2597_v53, %v2596_v57  ;;  %1328 = vrsqrt.f32 %v2341_v34  ;;  %vm735_vm5 = vcmp.lt.f32.partialorder %v2598_v58, 0.0 }
  0xb8   : > { %v750_v3 = vsel %vm734_vm1, %v742_v50, %v726_v10  ;;  %v719_v40 = vsub.f32 3.1415927, %v703_v12  ;;  %v680_v47 = vmul.f32 %v672_v6, %v2223_v0  ;;  %vm761_vm6 = vcmp.le.f32.partialorder %v2003_v7, 1.0 }
  0xb9   : > { %758 = vst [vmem:[%s2257_s8 + $0x28] sm:$0xff] %v750_v3  ;;  %vm763_vm8 = vcmp.le.f32.partialorder %v2035_v42, 1.0  ;;  %vm765_vm7 = vcmp.le.f32.partialorder %v2097_v8, 1.0  ;;  %vm767_vm9 = vcmp.le.f32.partialorder %v2595_v13, 1.0  ;;  %vm712_vm10 = vcmp.lt.f32.partialorder %v2599_v24, 0.0 }
  0xba   : > { %v727_v60 = vsel %vm711_vm3, %v719_v40, %v703_v12  ;;  %v696_v41 = vsub.f32 1.5707964, %v680_v47  ;;  %vm769_vm11 = vmpackc.low %vm763_vm8, %vm761_vm6  ;;  %vm762_vm12 = vcmp.le.f32.partialorder %v2013_v14, 1.0  ;;  %vm764_vm13 = vcmp.le.f32.partialorder %v2048_v55, 1.0 }
  0xbb   : > { %v743_v4 = vsub.f32 0.0, %v727_v60  ;;  %vm770_vm14 = vmpackc.low %vm767_vm9, %vm765_vm7  ;;  %vm766_vm15 = vcmp.le.f32.partialorder %v2593_v11, 1.0  ;;  %vm768_vm0 = vcmp.le.f32.partialorder %v2341_v34, 1.0  ;;  %vm736_vm2 = vcmp.lt.f32.partialorder %v2600_v17, 0.0 }
  0xbc   : > { %v704_v0 = vsel %vm688_vm4, %v696_v41, %v680_v47  ;;  %vm771_vm1 = vmpackc.even %vm770_vm14, %vm769_vm11  ;;  %v1592_v20 = vmov 0   ;;  %vm495_vm4 = vcmp.eq.f32.partialorder %v2097_v8, inf  ;;  %v498_v38 = vand.u32 2147483648, %v2097_v8 }
  0xbd   : > { %v751_v1 = vsel %vm735_vm5, %v743_v4, %v727_v60  ;;  %v720_v7 = vsub.f32 3.1415927, %v704_v0  ;;  %v775_v23 = vsel %vm771_vm1, 16843009, %v1592_v20  ;;  %vm2370_vm3 = vmpackc.low %vm764_vm13, %vm762_vm12  ;;  %vm497_vm6 = vcmp.eq.f32.partialorder %v2097_v8, 0.0 }
  0xbe   : > { %759 = vst [vmem:[%s2257_s8 + $0x30] sm:$0xff] %v751_v1  ;;  %777 = vst [vmem:[%s376_s15] sm:$0xff] %v775_v23  ;;  %vm502_vm7 = vcmp.eq.f32.partialorder %v2593_v11, inf  ;;  %v505_v5 = vand.u32 2147483648, %v2593_v11  ;;  %vm504_vm9 = vcmp.eq.f32.partialorder %v2593_v11, 0.0  ;;  %v512_v62 = vand.u32 2147483648, %v2595_v13 }
  0xbf   : > { %v728_v42 = vsel %vm712_vm10, %v720_v7, %v704_v0  ;;  %vm773_vm5 = vmpackc.low %vm768_vm0, %vm766_vm15  ;;  %vm509_vm10 = vcmp.eq.f32.partialorder %v2595_v13, inf }
  0xc0   : > { %v1323_v36 = vpop.eup %1322  ;;  %v744_v37 = vsub.f32 0.0, %v728_v42  ;;  %vm774_vm8 = vmpackc.even %vm773_vm5, %vm2370_vm3 }
  0xc1   : > { %v494_v14 = vmul.f32 %v1323_v36, %v2097_v8  ;;  %v776_v51 = vsel %vm774_vm8, 16843009, %v1592_v20 }
  0xc2   : > { %v1325_v55 = vpop.eup %1324  ;;  %v752_v31 = vsel %vm736_vm2, %v744_v37, %v728_v42  ;;  %778 = vst [vmem:[%s376_s15 + $0x8] sm:$0xff] %v776_v51  ;;  %s1444_s15 = scalar_lea.vmem %s1443_s11, 2048 }
  0xc3   : > { %760 = vst [vmem:[%s2257_s8 + $0x38] sm:$0xff] %v752_v31  ;;  %v496_v26 = vsel %vm495_vm4, %v2097_v8, %v494_v14  ;;  %v501_v35 = vmul.f32 %v1325_v55, %v2593_v11  ;;  %v1327_v22 = vpop.eup %1326  ;;  %s1438_s8 = scalar_lea.vmem %s2375_s29, 1024 }
  0xc4   : > { %v499_v25 = vsel %vm497_vm6, %v498_v38, %v496_v26  ;;  %p1439_p7 = scmp.ne.s32.totalorder %s2375_s29, %s1438_s8  ;;  %p1446_p3 = scmp.lt.s32.totalorder %s1444_s15, %s1438_s8 }
  0xc6   : > { %p1440_p10 = pnand %p1439_p7, %p1686_p9  ;;  %p1447_p8 = por %p1446_p3, %p1445_p13 }
  0xc8   : > { %p1441_p1 = pneg %p1440_p10 }
  0xca   : > { %p1448_p0 = pnand %p1447_p8, %p1441_p1 }
  0xcc   : > { %1451 = shalt.err (!%p1448_p0)
}
  0xcd   : > { %s1452_s27 = scalar_lea.hbm %s2391_s17, 1024  ;;  %s1456_s16 = scalar_lea.hbm %s2551_s5, 2048 }
  0xce   : > { %p1453_p2 = scmp.ne.s32.totalorder %s2391_s17, %s1452_s27  ;;  %p1457_p4 = scmp.lt.s32.totalorder %s2391_s17, %s2551_s5 }
  0xcf   : > { %p1458_p7 = scmp.lt.s32.totalorder %s1456_s16, %s1452_s27 }
  0xd0   : > { %p1454_p5 = pnand %p1453_p2, %p1686_p9 }
  0xd1   : > { %p1459_p10 = por %p1458_p7, %p1457_p4 }
  0xd2   : > { %p1455_p6 = pneg %p1454_p5 }
  0xd4   : > { %p1460_p1 = pnand %p1459_p10, %p1455_p6 }
  0xd6   : > { %1463 = shalt.err (!%p1460_p1)
}
  0xd7   : > { %1213 = dma.vmem_to_hbm [thread:$0]  (%p1686_p9), %s2375_s29, 1024, %s2391_s17, %s2416_s14, %s1589_s18, %s1589_s18, %s1590_s0   ;;  %v503_v8 = vsel %vm502_vm7, %v2593_v11, %v501_v35  ;;  %v508_v33 = vmul.f32 %v1327_v22, %v2595_v13  ;;  %vm511_vm11 = vcmp.eq.f32.partialorder %v2595_v13, 0.0 }
  0xd8   : > { %525 = vst [vmem:[%s2282_s30 + $0x20] sm:$0xff] %v499_v25  ;;  %s1464_s8 = scalar_lea.vmem %s2397_s23, 256  ;;  %s1594_s13 = smov [#allocation13]  }
  0xd9   : > { %p1465_p13 = scmp.ne.s32.totalorder %s2397_s23, %s1464_s8  ;;  %s1468_s11 = sshll.u32 %s1594_s13, 4  ;;  %s1469_s11 = int_to_ptr.vmem [resolvable:$false] %s1468_s11 }
  0xda   : > { %s1470_s15 = scalar_lea.vmem %s1469_s11, 512  ;;  %p1471_p0 = scmp.lt.s32.totalorder %s2397_s23, %s1469_s11 }
  0xdb   : > { %p1466_p3 = pnand %p1465_p13, %p1686_p9  ;;  %p1472_p2 = scmp.lt.s32.totalorder %s1470_s15, %s1464_s8 }
  0xdd   : > { %p1467_p8 = pneg %p1466_p3  ;;  %p1473_p5 = por %p1472_p2, %p1471_p0 }
  0xdf   : > { %p1474_p6 = pnand %p1473_p5, %p1467_p8 }
  0xe1   : > { %1477 = shalt.err (!%p1474_p6)
}
  0xe2   : > { %s1478_s29 = scalar_lea.hbm %s2402_s12, 256  ;;  %s1482_s24 = scalar_lea.hbm %s2552_s6, 512 }
  0xe3   : > { %p1479_p4 = scmp.ne.s32.totalorder %s2402_s12, %s1478_s29  ;;  %p1483_p1 = scmp.lt.s32.totalorder %s2402_s12, %s2552_s6 }
  0xe4   : > { %p1484_p13 = scmp.lt.s32.totalorder %s1482_s24, %s1478_s29 }
  0xe5   : > { %p1480_p7 = pnand %p1479_p4, %p1686_p9 }
  0xe6   : > { %p1485_p3 = por %p1484_p13, %p1483_p1 }
  0xe7   : > { %p1481_p10 = pneg %p1480_p7 }
  0xe9   : > { %p1486_p8 = pnand %p1485_p3, %p1481_p10 }
  0xeb   : > { %1489 = shalt.err (!%p1486_p8)
}
  0xec   : > { %1214 = dma.vmem_to_hbm [thread:$0]  (%p1686_p9), %s2397_s23, 256, %s2402_s12, %s2416_s14   ;;  %v1329_v32 = vpop.eup %1328  ;;  %v506_v44 = vsel %vm504_vm9, %v505_v5, %v503_v8  ;;  %vm516_vm12 = vcmp.eq.f32.partialorder %v2341_v34, inf  ;;  %v519_v45 = vand.u32 2147483648, %v2341_v34  ;;  %v510_v2 = vsel %vm509_vm10, %v2595_v13, %v508_v33 }
  0xed   : > { %s854_s20 = sshll.u32 %s2282_s30, 4  ;;  %526 = vst [vmem:[%s2282_s30 + $0x28] sm:$0xff] %v506_v44  ;;  %v515_v15 = vmul.f32 %v1329_v32, %v2341_v34  ;;  %vm518_vm13 = vcmp.eq.f32.partialorder %v2341_v34, 0.0  ;;  %v513_v28 = vsel %vm511_vm11, %v512_v62, %v510_v2  ;;  %s2494_s14 = scalar_lea.hbm %s2550_s4, %s1800_s9  ;;  %s2486_s20 = int_to_ptr.vmem [resolvable:$true] %s854_s20 }
  0xee   : > { %527 = vst [vmem:[%s2282_s30 + $0x30] sm:$0xff] %v513_v28  ;;  %s1490_s28 = scalar_lea.vmem %s2486_s20, 1024  ;;  %s1595_s8 = smov [#allocation10]  }
  0xef   : > { %v517_v61 = vsel %vm516_vm12, %v2341_v34, %v515_v15  ;;  %p1491_p0 = scmp.ne.s32.totalorder %s2486_s20, %s1490_s28  ;;  %s1494_s13 = sshll.u32 %s1595_s8, 4  ;;  %s1495_s13 = int_to_ptr.vmem [resolvable:$false] %s1494_s13 }
  0xf0   : > { %v520_v52 = vsel %vm518_vm13, %v519_v45, %v517_v61  ;;  %s1496_s11 = scalar_lea.vmem %s1495_s13, 2048  ;;  %p1497_p6 = scmp.lt.s32.totalorder %s2486_s20, %s1495_s13 }
  0xf1   : > { %528 = vst [vmem:[%s2282_s30 + $0x38] sm:$0xff] %v520_v52  ;;  %p1492_p2 = pnand %p1491_p0, %p1686_p9  ;;  %p1498_p4 = scmp.lt.s32.totalorder %s1496_s11, %s1490_s28 }
  0xf3   : > { %p1493_p5 = pneg %p1492_p2  ;;  %p1499_p7 = por %p1498_p4, %p1497_p6 }
  0xf5   : > { %p1500_p10 = pnand %p1499_p7, %p1493_p5 }
  0xf7   : > { %1503 = shalt.err (!%p1500_p10)
}
  0xf8   : > { %s1504_s9 = scalar_lea.hbm %s2494_s14, 1024  ;;  %s1508_s29 = scalar_lea.hbm %s2550_s4, 2048 }
  0xf9   : > { %p1505_p1 = scmp.ne.s32.totalorder %s2494_s14, %s1504_s9  ;;  %p1509_p8 = scmp.lt.s32.totalorder %s2494_s14, %s2550_s4 }
  0xfa   : > { %p1510_p0 = scmp.lt.s32.totalorder %s1508_s29, %s1504_s9 }
  0xfb   : > { %p1506_p13 = pnand %p1505_p1, %p1686_p9 }
  0xfc   : > { %p1511_p2 = por %p1510_p0, %p1509_p8 }
  0xfd   : > { %p1507_p3 = pneg %p1506_p13 }
  0xff   : > { %p1512_p5 = pnand %p1511_p2, %p1507_p3 }
 0x101   : > { %1515 = shalt.err (!%p1512_p5)
}
 0x102   : > { %1212 = dma.vmem_to_hbm [thread:$0]  (%p1686_p9), %s2486_s20, 1024, %s2494_s14, %s1843_s7, %s1589_s18, %s1589_s18, %s1590_s0  }
 0x103 PF: > { %s904_s19 = sand.u32 1, %s1562_s21   ;;  %p1228_p6 = pnand %p1139_p12, %p1695_p11 }
 0x104   : > { %s905_s16 = scalar_lea.sflag [#allocation4], %s904_s19 }
 0x105   : > { %p1229_p4 = pneg %p1228_p6 }
 0x107   : > { %1549 = dma.done.wait (%p1229_p4), %s905_s16, 1024  }
 0x108   : > { %1551 = vsyncadd (%p1229_p4), %s905_s16, 4294966272  ;;  %s2605_s10 = sadd.s32 4294967294, %s1582_s26  }
 0x109   : > { %s913_s23 = sand.u32 1, %s2605_s10  }
 0x10a   : > { %s914_s12 = scalar_lea.sflag [#allocation9], %s913_s23 }
 0x10b   : > { %1553 = dma.done.wait (%p1229_p4), %s914_s12, 2048  }
 0x10c   : > { %1555 = vsyncadd (%p1229_p4), %s914_s12, 4294965248  ;;  %s932_s28 = scalar_lea.sflag [#allocation12], %s913_s23 }
 0x10d   : > { %1557 = dma.done.wait (%p1229_p4), %s932_s28, 1280  }
 0x10e   : > { %1559 = vsyncadd (%p1229_p4), %s932_s28, 4294966016  ;;  %s32_s26 = sadd.s32 1, %s1582_s26   ;;  %s2606_s7 = sld [smem:[#allocation19_spill]] }
 0x10f   : > { %p29_p9 = scmp.ge.s32.totalorder %s32_s26, 4   ;;  %s2607_s23 = sld [smem:[#allocation21_spill]] }
 0x110   : > { %s2608_s18 = sld [smem:[#allocation20_spill]]  ;;  %s2609_s21 = smov %s1566_s22 }
 0x111   : > { %s2611_s24 = smov %s1578_s25 }
 0x112   :  { %31 = sbr.rel (!%p29_p9) target bundleno = 14 (0xe), region = 150 }
 0x114   : > { %s2610_s22 = smov %s2606_s7 }
 0x116   : > { %s2612_s25 = smov %s2608_s18 }
 0x117   :  { %946 = vsyncpa [#allocation3], 1 }
 0x118   :  { %948 = vsyncpa [#allocation3 + $0x1], 1 }
 0x119   :  { %949 = vsyncpa [#allocation6], 1 }
 0x11a   :  { %951 = vsyncpa [#allocation6 + $0x1], 1 }
 0x11b   :  { %952 = vsyncpa [#allocation4], 1 }
 0x11c   :  { %954 = vsyncpa [#allocation4 + $0x1], 1 }
 0x11d   :  { %955 = vsyncpa [#allocation9], 1 }
 0x11e   :  { %957 = vsyncpa [#allocation9 + $0x1], 1 }
 0x11f   :  { %958 = vsyncpa [#allocation12], 1 }
 0x120   :  { %960 = vsyncpa [#allocation12 + $0x1], 1 }

</bundles_post_ra>
